<compile_context>
chip_gen: v7x
topology: tpu7x:2x2x1
jax: 0.10.0
libtpu: 0.0.40
codegen_flags: <defaults>
</compile_context>

<pallas_src>
import functools

import jax
import jax.numpy as jnp
from jax.experimental import pallas as pl
from jax.experimental.pallas import tpu as pltpu

LANE = 128      # vreg lane width (last dim)
SUBLANE = 8     # vreg sublane count (second-to-last dim, f32)


def _round_up(x, m):
    return ((x + m - 1) // m) * m


# ---------------- fused Pallas kernel ----------------

def fused_gcn_kernel(a_ref, x_ref,
                     w1_ref, b1_ref, w2_ref, b2_ref, w3_ref, b3_ref,
                     wc_ref, bc_ref, o_ref, *, n_nodes):
    """a_ref: (N_pad, N_pad) row-normalized adjacency (zero rows/cols for padded nodes).
    x_ref : (N_pad, F_pad) node features (zero-padded columns).
    w*_ref: (F_pad_in, F_pad_out) zero-padded Linear weights; b*_ref: (1, F_pad_out).
    o_ref : (SUBLANE, C_pad) -- classifier logits broadcast over sublanes (lane-dense store).
    """
    # Adjacency in bf16 for the MXU; accumulate in f32.
    a_bf16 = a_ref[...].astype(jnp.bfloat16)

    def gcn_layer(h_f32, w_ref, b_ref):
        # mean aggregation over in-neighbors: A_norm @ h  (== torch.mean(mailbox, 1))
        agg = jnp.dot(a_bf16, h_f32.astype(jnp.bfloat16),
                      preferred_element_type=jnp.float32)
        # NodeApplyModule: Linear + ReLU (bias add / ReLU kept in f32 on the VPU)
        z = jnp.dot(agg.astype(jnp.bfloat16), w_ref[...].astype(jnp.bfloat16),
                    preferred_element_type=jnp.float32) + b_ref[...]
        return jnp.maximum(z, 0.0)

    h = x_ref[...]                       # (N_pad, F_pad) f32, stays on-chip
    h = gcn_layer(h, w1_ref, b1_ref)
    h = gcn_layer(h, w2_ref, b2_ref)
    h = gcn_layer(h, w3_ref, b3_ref)     # (N_pad, H_pad)

    # dgl.mean_nodes over the *real* nodes only (padded rows carry ReLU(bias) and must
    # be excluded here; they never affect real nodes via A_norm because those columns are 0).
    row_ids = jax.lax.broadcasted_iota(jnp.int32, h.shape, 0)
    h_masked = jnp.where(row_ids < n_nodes, h, 0.0)
    hg = jnp.sum(h_masked, axis=0, keepdims=True) / jnp.float32(n_nodes)   # (1, H_pad)

    # classifier Linear
    logits = jnp.dot(hg.astype(jnp.bfloat16), wc_ref[...].astype(jnp.bfloat16),
                     preferred_element_type=jnp.float32) + bc_ref[...]      # (1, C_pad)

    # Broadcast over sublanes so the store is a full, unmasked (8, 128) vst.
    o_ref[...] = jnp.broadcast_to(logits, o_ref.shape).astype(o_ref.dtype)


# ---------------- wrapper ----------------

def gcn_forward(a_norm, features, params):
    """Returns (1, C_pad) logits; real classes live in the first n_classes columns."""
    n = a_norm.shape[0]
    f_in = features.shape[1]
    # Pad the node dim to a full lane width: N appears both as the lane dim of A and as
    # the sublane (and contraction) dim of h, so padding to 128 gives clean MXU tiles
    # and avoids masked layouts entirely.  Cost is negligible at these sizes.
    n_pad = max(_round_up(n, LANE), LANE)
    f_pad = max(_round_up(f_in, LANE), LANE)

    # Zero-pad graph + features (zeros keep padded nodes/features inert).
    a_p = jnp.zeros((n_pad, n_pad), jnp.float32).at[:n, :n].set(a_norm)
    x_p = jnp.zeros((n_pad, f_pad), jnp.float32).at[:n, :f_in].set(features)

    (w1, b1), (w2, b2), (w3, b3) = params["layers"]
    wc, bc = params["classify"]
    c_pad = wc.shape[1]

    vmem = pl.BlockSpec(memory_space=pltpu.MemorySpace.VMEM)
    out_padded = pl.pallas_call(
        functools.partial(fused_gcn_kernel, n_nodes=n),
        out_shape=jax.ShapeDtypeStruct((SUBLANE, c_pad), jnp.float32),
        in_specs=[vmem] * 10,
        out_specs=vmem,
        compiler_params=pltpu.CompilerParams(vmem_limit_bytes=64 << 20),
    )(a_p, x_p, w1, b1, w2, b2, w3, b3, wc, bc)
    return out_padded[:1, :]


gcn_forward = jax.jit(gcn_forward)


def init_linear(key, in_feats, out_feats, in_pad, out_pad):
    """torch.nn.Linear default init U(-1/sqrt(in), 1/sqrt(in)), stored as (in, out),
    zero-padded to lane-dense (in_pad, out_pad) so padded channels contribute nothing."""
    kw, kb = jax.random.split(key)
    bound = 1.0 / jnp.sqrt(jnp.float32(in_feats))
    w = jax.random.uniform(kw, (in_feats, out_feats), jnp.float32, -bound, bound)
    b = jax.random.uniform(kb, (out_feats,), jnp.float32, -bound, bound)
    w_p = jnp.zeros((in_pad, out_pad), jnp.float32).at[:in_feats, :out_feats].set(w)
    b_p = jnp.zeros((1, out_pad), jnp.float32).at[0, :out_feats].set(b)
    return w_p, b_p


if __name__ == "__main__":
    N = 8            # number of nodes in the (single) graph
    in_dim = 4
    hidden_dim = 32
    n_classes = 4

    f_pad = max(_round_up(in_dim, LANE), LANE)
    h_pad = max(_round_up(hidden_dim, LANE), LANE)
    c_pad = max(_round_up(n_classes, LANE), LANE)

    key = jax.random.PRNGKey(0)
    k_adj, k_feat, k1, k2, k3, k4 = jax.random.split(key, 6)

    # deterministic random graph with self-loops so every node has >= 1 in-edge
    adj = (jax.random.uniform(k_adj, (N, N)) < 0.3).astype(jnp.float32)
    adj = jnp.maximum(adj, jnp.eye(N, dtype=jnp.float32))
    deg = jnp.sum(adj, axis=1, keepdims=True)
    a_norm = adj / deg                                   # row-normalized: mean reduce

    features = jax.random.normal(k_feat, (N, in_dim), jnp.float32)

    params = {
        "layers": [
            init_linear(k1, in_dim, hidden_dim, f_pad, h_pad),
            init_linear(k2, hidden_dim, hidden_dim, h_pad, h_pad),
            init_linear(k3, hidden_dim, hidden_dim, h_pad, h_pad),
        ],
        "classify": init_linear(k4, hidden_dim, n_classes, h_pad, c_pad),
    }

    out = gcn_forward(a_norm, features, params)[:, :n_classes]
    jax.block_until_ready(out)
    assert out.shape == (1, n_classes)
    print("KERNEL_OK")
</pallas_src>

<mosaic_0001>
module attributes {stable_mosaic.version = 11 : i64} {
  func.func @fused_gcn_kernel(%arg0: memref<128x128xf32, #tpu.memory_space<vmem>>, %arg1: memref<128x128xf32, #tpu.memory_space<vmem>>, %arg2: memref<128x128xf32, #tpu.memory_space<vmem>>, %arg3: memref<1x128xf32, #tpu.memory_space<vmem>>, %arg4: memref<128x128xf32, #tpu.memory_space<vmem>>, %arg5: memref<1x128xf32, #tpu.memory_space<vmem>>, %arg6: memref<128x128xf32, #tpu.memory_space<vmem>>, %arg7: memref<1x128xf32, #tpu.memory_space<vmem>>, %arg8: memref<128x128xf32, #tpu.memory_space<vmem>>, %arg9: memref<1x128xf32, #tpu.memory_space<vmem>>, %arg10: memref<8x128xf32, #tpu.memory_space<vmem>>) attributes {dimension_semantics = [], scalar_prefetch = 0 : i64, scratch_operands = 0 : i64, tpu.core_type = #tpu.core_type<tc>} {
    %c0 = arith.constant 0 : index
    %c0_0 = arith.constant 0 : index
    %0 = vector.load %arg0[%c0, %c0_0] : memref<128x128xf32, #tpu.memory_space<vmem>>, vector<128x128xf32>
    %1 = arith.truncf %0 : vector<128x128xf32> to vector<128x128xbf16>
    %c0_1 = arith.constant 0 : index
    %c0_2 = arith.constant 0 : index
    %2 = vector.load %arg1[%c0_1, %c0_2] : memref<128x128xf32, #tpu.memory_space<vmem>>, vector<128x128xf32>
    %3 = arith.truncf %2 : vector<128x128xf32> to vector<128x128xbf16>
    %cst = arith.constant dense<0.000000e+00> : vector<128x128xf32>
    %4 = tpu.matmul %1, %3, %cst {dimension_numbers = #tpu.dot_dimension_numbers<[1], [0], [0], [1], [0, 0, 1, 1], [], []>} : vector<128x128xbf16>, vector<128x128xbf16>, vector<128x128xf32> -> vector<128x128xf32>
    %5 = arith.truncf %4 : vector<128x128xf32> to vector<128x128xbf16>
    %c0_3 = arith.constant 0 : index
    %c0_4 = arith.constant 0 : index
    %6 = vector.load %arg2[%c0_3, %c0_4] : memref<128x128xf32, #tpu.memory_space<vmem>>, vector<128x128xf32>
    %7 = arith.truncf %6 : vector<128x128xf32> to vector<128x128xbf16>
    %cst_5 = arith.constant dense<0.000000e+00> : vector<128x128xf32>
    %8 = tpu.matmul %5, %7, %cst_5 {dimension_numbers = #tpu.dot_dimension_numbers<[1], [0], [0], [1], [0, 0, 1, 1], [], []>} : vector<128x128xbf16>, vector<128x128xbf16>, vector<128x128xf32> -> vector<128x128xf32>
    %c0_6 = arith.constant 0 : index
    %c0_7 = arith.constant 0 : index
    %9 = vector.load %arg3[%c0_6, %c0_7] : memref<1x128xf32, #tpu.memory_space<vmem>>, vector<1x128xf32>
    %10 = vector.broadcast %9 : vector<1x128xf32> to vector<128x128xf32>
    %11 = arith.addf %8, %10 : vector<128x128xf32>
    %cst_8 = arith.constant 0.000000e+00 : f32
    %12 = vector.broadcast %cst_8 : f32 to vector<128x128xf32>
    %13 = arith.maximumf %11, %12 : vector<128x128xf32>
    %14 = arith.truncf %13 : vector<128x128xf32> to vector<128x128xbf16>
    %cst_9 = arith.constant dense<0.000000e+00> : vector<128x128xf32>
    %15 = tpu.matmul %1, %14, %cst_9 {dimension_numbers = #tpu.dot_dimension_numbers<[1], [0], [0], [1], [0, 0, 1, 1], [], []>} : vector<128x128xbf16>, vector<128x128xbf16>, vector<128x128xf32> -> vector<128x128xf32>
    %16 = arith.truncf %15 : vector<128x128xf32> to vector<128x128xbf16>
    %c0_10 = arith.constant 0 : index
    %c0_11 = arith.constant 0 : index
    %17 = vector.load %arg4[%c0_10, %c0_11] : memref<128x128xf32, #tpu.memory_space<vmem>>, vector<128x128xf32>
    %18 = arith.truncf %17 : vector<128x128xf32> to vector<128x128xbf16>
    %cst_12 = arith.constant dense<0.000000e+00> : vector<128x128xf32>
    %19 = tpu.matmul %16, %18, %cst_12 {dimension_numbers = #tpu.dot_dimension_numbers<[1], [0], [0], [1], [0, 0, 1, 1], [], []>} : vector<128x128xbf16>, vector<128x128xbf16>, vector<128x128xf32> -> vector<128x128xf32>
    %c0_13 = arith.constant 0 : index
    %c0_14 = arith.constant 0 : index
    %20 = vector.load %arg5[%c0_13, %c0_14] : memref<1x128xf32, #tpu.memory_space<vmem>>, vector<1x128xf32>
    %21 = vector.broadcast %20 : vector<1x128xf32> to vector<128x128xf32>
    %22 = arith.addf %19, %21 : vector<128x128xf32>
    %cst_15 = arith.constant 0.000000e+00 : f32
    %23 = vector.broadcast %cst_15 : f32 to vector<128x128xf32>
    %24 = arith.maximumf %22, %23 : vector<128x128xf32>
    %25 = arith.truncf %24 : vector<128x128xf32> to vector<128x128xbf16>
    %cst_16 = arith.constant dense<0.000000e+00> : vector<128x128xf32>
    %26 = tpu.matmul %1, %25, %cst_16 {dimension_numbers = #tpu.dot_dimension_numbers<[1], [0], [0], [1], [0, 0, 1, 1], [], []>} : vector<128x128xbf16>, vector<128x128xbf16>, vector<128x128xf32> -> vector<128x128xf32>
    %27 = arith.truncf %26 : vector<128x128xf32> to vector<128x128xbf16>
    %c0_17 = arith.constant 0 : index
    %c0_18 = arith.constant 0 : index
    %28 = vector.load %arg6[%c0_17, %c0_18] : memref<128x128xf32, #tpu.memory_space<vmem>>, vector<128x128xf32>
    %29 = arith.truncf %28 : vector<128x128xf32> to vector<128x128xbf16>
    %cst_19 = arith.constant dense<0.000000e+00> : vector<128x128xf32>
    %30 = tpu.matmul %27, %29, %cst_19 {dimension_numbers = #tpu.dot_dimension_numbers<[1], [0], [0], [1], [0, 0, 1, 1], [], []>} : vector<128x128xbf16>, vector<128x128xbf16>, vector<128x128xf32> -> vector<128x128xf32>
    %c0_20 = arith.constant 0 : index
    %c0_21 = arith.constant 0 : index
    %31 = vector.load %arg7[%c0_20, %c0_21] : memref<1x128xf32, #tpu.memory_space<vmem>>, vector<1x128xf32>
    %32 = vector.broadcast %31 : vector<1x128xf32> to vector<128x128xf32>
    %33 = arith.addf %30, %32 : vector<128x128xf32>
    %cst_22 = arith.constant 0.000000e+00 : f32
    %34 = vector.broadcast %cst_22 : f32 to vector<128x128xf32>
    %35 = arith.maximumf %33, %34 : vector<128x128xf32>
    %36 = tpu.iota {dimensions = array<i32: 0>} : vector<128x128xi32>
    %c8_i32 = arith.constant 8 : i32
    %37 = vector.broadcast %c8_i32 : i32 to vector<128x128xi32>
    %38 = arith.cmpi slt, %36, %37 : vector<128x128xi32>
    %cst_23 = arith.constant 0.000000e+00 : f32
    %39 = vector.broadcast %cst_23 : f32 to vector<128x128xf32>
    %40 = arith.select %38, %35, %39 : vector<128x128xi1>, vector<128x128xf32>
    %cst_24 = arith.constant dense<0.000000e+00> : vector<128xf32>
    %41 = vector.multi_reduction <add>, %40, %cst_24 [0] : vector<128x128xf32> to vector<128xf32>
    %42 = vector.shape_cast %41 : vector<128xf32> to vector<1x128xf32>
    %cst_25 = arith.constant 8.000000e+00 : f32
    %43 = vector.broadcast %cst_25 : f32 to vector<1x128xf32>
    %44 = arith.divf %42, %43 : vector<1x128xf32>
    %45 = arith.truncf %44 : vector<1x128xf32> to vector<1x128xbf16>
    %c0_26 = arith.constant 0 : index
    %c0_27 = arith.constant 0 : index
    %46 = vector.load %arg8[%c0_26, %c0_27] : memref<128x128xf32, #tpu.memory_space<vmem>>, vector<128x128xf32>
    %47 = arith.truncf %46 : vector<128x128xf32> to vector<128x128xbf16>
    %cst_28 = arith.constant dense<0.000000e+00> : vector<1x128xf32>
    %48 = tpu.matmul %45, %47, %cst_28 {dimension_numbers = #tpu.dot_dimension_numbers<[1], [0], [0], [1], [0, 0, 1, 1], [], []>} : vector<1x128xbf16>, vector<128x128xbf16>, vector<1x128xf32> -> vector<1x128xf32>
    %c0_29 = arith.constant 0 : index
    %c0_30 = arith.constant 0 : index
    %49 = vector.load %arg9[%c0_29, %c0_30] : memref<1x128xf32, #tpu.memory_space<vmem>>, vector<1x128xf32>
    %50 = arith.addf %48, %49 : vector<1x128xf32>
    %51 = vector.shape_cast %50 : vector<1x128xf32> to vector<1x128xf32>
    %52 = vector.broadcast %51 : vector<1x128xf32> to vector<8x128xf32>
    %c0_31 = arith.constant 0 : index
    %c0_32 = arith.constant 0 : index
    %53 = vector.load %arg10[%c0_31, %c0_32] : memref<8x128xf32, #tpu.memory_space<vmem>>, vector<8x128xf32>
    tpu.vector_store %arg10[%c0_31, %c0_32], %52 {strides = array<i32>} : memref<8x128xf32, #tpu.memory_space<vmem>>, vector<8x128xf32>,
    return
  }
}

</mosaic_0001>

<bundles_post_ra>
// kernel: gcn_forward.1
= control target key start
LH: loop header
LB: loop body
LE: loop exit
PB: predicated region body
PF: predicated region fallthrough
CT: control target
= control target key end

     0   :  { %15 = vsyncpa [#allocation3], 0  ;;  %s2021_s0 = inlined_call_operand.hbm [shape: f32[128,128], index: 0, kind: input, shape index: {}]   ;;  %s2022_s1 = inlined_call_operand.hbm [shape: f32[128,128], index: 1, kind: input, shape index: {}]   ;;  %s2023_s2 = inlined_call_operand.hbm [shape: f32[128,128], index: 2, kind: input, shape index: {}]   ;;  %s2024_s3 = inlined_call_operand.hbm [shape: f32[1,128], index: 3, kind: input, shape index: {}]   ;;  %s2025_s4 = inlined_call_operand.hbm [shape: f32[128,128], index: 4, kind: input, shape index: {}]   ;;  %s2026_s5 = inlined_call_operand.hbm [shape: f32[1,128], index: 5, kind: input, shape index: {}]   ;;  %s2027_s6 = inlined_call_operand.hbm [shape: f32[128,128], index: 6, kind: input, shape index: {}]   ;;  %s2028_s7 = inlined_call_operand.hbm [shape: f32[1,128], index: 7, kind: input, shape index: {}]   ;;  %s2029_s8 = inlined_call_operand.hbm [shape: f32[128,128], index: 8, kind: input, shape index: {}]   ;;  %s2030_s9 = inlined_call_operand.hbm [shape: f32[1,128], index: 9, kind: input, shape index: {}]   ;;  %s2031_s10 = inlined_call_operand.hbm [shape: f32[8,128], index: 10, kind: output, shape index: {}]  }
   0x1   :  { %16 = vsyncpa [#allocation6], 0 }
   0x2   :  { %17 = vsyncpa [#allocation9], 0 }
   0x3   :  { %18 = vsyncpa [#allocation12], 0 }
   0x4   :  { %19 = vsyncpa [#allocation15], 0 }
   0x5   :  { %20 = vsyncpa [#allocation18], 0 }
   0x6   :  { %21 = vsyncpa [#allocation4], 0  ;;  %s1730_s13 = smov [#allocation5]   ;;  %s1731_s15 = smov [#allocation8]  }
   0x7   :  { %s39_s14 = sshll.u32 %s1730_s13, 4  ;;  %s64_s16 = sshll.u32 %s1731_s15, 4  ;;  %s40_s14 = int_to_ptr.vmem [resolvable:$true] %s39_s14  ;;  %s1800_s16 = int_to_ptr.vmem [resolvable:$true] %s64_s16 }
   0x8   :  { %s1474_s19 = scalar_lea.hbm %s2022_s1, 2048 }
   0x9   :  { %p1475_p0 = scmp.ne.s32.totalorder %s2022_s1, %s1474_s19  ;;  %p1478_p1 = scmp.lt.u32.totalorder %s1474_s19, %s2022_s1 }
   0xb   :  { %p1480_p2 = pnand %p1478_p1, %p1475_p0 }
   0xd   :  { %1483 = shalt.err (!%p1480_p2)
}
   0xe   :  { %s1484_s24 = scalar_lea.vmem %s40_s14, 2048  ;;  %p1489_p4 = scmp.lt.s32.totalorder %s40_s14, %s40_s14 }
   0xf   :  { %p1485_p3 = scmp.ne.s32.totalorder %s40_s14, %s1484_s24  ;;  %p1490_p5 = scmp.lt.s32.totalorder %s1484_s24, %s1484_s24 }
  0x11   :  { %p1491_p6 = por %p1490_p5, %p1489_p4 }
  0x13   :  { %p1492_p7 = pnand %p1491_p6, %p1485_p3 }
  0x15   :  { %1495 = shalt.err (!%p1492_p7)
}
  0x16   :  { %s1732_s25 = smov 128   ;;  %s1733_s26 = smov 8  }
  0x17   :  { %45 = dma.hbm_to_vmem [thread:$0]  %s2022_s1, 2048, %s40_s14, [#allocation6], %s1732_s25, %s1732_s25, %s1733_s26  }
  0x18   :  { %s1496_s11 = scalar_lea.hbm %s2024_s3, 16 }
  0x19   :  { %p1497_p8 = scmp.ne.s32.totalorder %s2024_s3, %s1496_s11  ;;  %p1500_p9 = scmp.lt.u32.totalorder %s1496_s11, %s2024_s3 }
  0x1b   :  { %p1502_p10 = pnand %p1500_p9, %p1497_p8 }
  0x1d   :  { %1505 = shalt.err (!%p1502_p10)
}
  0x1e   :  { %s1506_s18 = scalar_lea.vmem %s1800_s16, 16  ;;  %s1510_s1 = scalar_lea.vmem %s1800_s16, 32 }
  0x1f   :  { %p1507_p11 = scmp.ne.s32.totalorder %s1800_s16, %s1506_s18  ;;  %p1511_p12 = scmp.lt.s32.totalorder %s1800_s16, %s1800_s16 }
  0x20   :  { %p1512_p13 = scmp.lt.s32.totalorder %s1510_s1, %s1506_s18 }
  0x22   :  { %p1513_p0 = por %p1512_p13, %p1511_p12 }
  0x24   :  { %p1514_p1 = pnand %p1513_p0, %p1507_p11 }
  0x26   :  { %1517 = shalt.err (!%p1514_p1)
}
  0x27   :  { %67 = dma.hbm_to_vmem [thread:$0]  %s2024_s3, 16, %s1800_s16, [#allocation9]  }
  0x28   :  { %s1734_s20 = smov [#allocation11]   ;;  %s1735_s22 = smov [#allocation14]  }
  0x29   :  { %s86_s21 = sshll.u32 %s1734_s20, 4  ;;  %s108_s23 = sshll.u32 %s1735_s22, 4  ;;  %s87_s21 = int_to_ptr.vmem [resolvable:$true] %s86_s21  ;;  %s109_s23 = int_to_ptr.vmem [resolvable:$true] %s108_s23 }
  0x2a   :  { %s1518_s28 = scalar_lea.hbm %s2026_s5, 16 }
  0x2b   :  { %p1519_p2 = scmp.ne.s32.totalorder %s2026_s5, %s1518_s28  ;;  %p1522_p3 = scmp.lt.u32.totalorder %s1518_s28, %s2026_s5 }
  0x2d   :  { %p1524_p4 = pnand %p1522_p3, %p1519_p2 }
  0x2f   :  { %1527 = shalt.err (!%p1524_p4)
}
  0x30   :  { %s1528_s3 = scalar_lea.vmem %s87_s21, 16  ;;  %s1532_s16 = scalar_lea.vmem %s87_s21, 32 }
  0x31   :  { %p1529_p5 = scmp.ne.s32.totalorder %s87_s21, %s1528_s3  ;;  %p1533_p6 = scmp.lt.s32.totalorder %s87_s21, %s87_s21 }
  0x32   :  { %p1534_p7 = scmp.lt.s32.totalorder %s1532_s16, %s1528_s3 }
  0x34   :  { %p1535_p8 = por %p1534_p7, %p1533_p6 }
  0x36   :  { %p1536_p9 = pnand %p1535_p8, %p1529_p5 }
  0x38   :  { %1539 = shalt.err (!%p1536_p9)
}
  0x39   :  { %89 = dma.hbm_to_vmem [thread:$0]  %s2026_s5, 16, %s87_s21, [#allocation12]  }
  0x3a   :  { %s1540_s1 = scalar_lea.hbm %s2028_s7, 16 }
  0x3b   :  { %p1541_p10 = scmp.ne.s32.totalorder %s2028_s7, %s1540_s1  ;;  %p1544_p11 = scmp.lt.u32.totalorder %s1540_s1, %s2028_s7 }
  0x3d   :  { %p1546_p12 = pnand %p1544_p11, %p1541_p10 }
  0x3f   :  { %1549 = shalt.err (!%p1546_p12)
}
  0x40   :  { %s1550_s24 = scalar_lea.vmem %s109_s23, 16  ;;  %s1554_s27 = scalar_lea.vmem %s109_s23, 32 }
  0x41   :  { %p1551_p13 = scmp.ne.s32.totalorder %s109_s23, %s1550_s24  ;;  %p1555_p0 = scmp.lt.s32.totalorder %s109_s23, %s109_s23 }
  0x42   :  { %p1556_p1 = scmp.lt.s32.totalorder %s1554_s27, %s1550_s24 }
  0x44   :  { %p1557_p2 = por %p1556_p1, %p1555_p0 }
  0x46   :  { %p1558_p3 = pnand %p1557_p2, %p1551_p13 }
  0x48   :  { %1561 = shalt.err (!%p1558_p3)
}
  0x49   :  { %111 = dma.hbm_to_vmem [thread:$0]  %s2028_s7, 16, %s109_s23, [#allocation15]  }
  0x4a   :  { %s1736_s28 = smov [#allocation2]   ;;  %s1737_s30 = smov [#allocation7]  }
  0x4b   :  { %s27_s29 = sshll.u32 %s1736_s28, 4  ;;  %s51_s11 = sshll.u32 %s1737_s30, 4  ;;  %s28_s29 = int_to_ptr.vmem [resolvable:$true] %s27_s29  ;;  %s1859_s11 = int_to_ptr.vmem [resolvable:$true] %s51_s11 }
  0x4c   :  { %s1562_s16 = scalar_lea.hbm %s2021_s0, 2048 }
  0x4d   :  { %p1563_p4 = scmp.ne.s32.totalorder %s2021_s0, %s1562_s16  ;;  %p1566_p5 = scmp.lt.u32.totalorder %s1562_s16, %s2021_s0 }
  0x4f   :  { %p1568_p6 = pnand %p1566_p5, %p1563_p4 }
  0x51   :  { %1571 = shalt.err (!%p1568_p6)
}
  0x52   :  { %s1572_s7 = scalar_lea.vmem %s28_s29, 2048  ;;  %p1577_p8 = scmp.lt.s32.totalorder %s28_s29, %s28_s29 }
  0x53   :  { %p1573_p7 = scmp.ne.s32.totalorder %s28_s29, %s1572_s7  ;;  %p1578_p9 = scmp.lt.s32.totalorder %s1572_s7, %s1572_s7 }
  0x55   :  { %p1579_p10 = por %p1578_p9, %p1577_p8 }
  0x57   :  { %p1580_p11 = pnand %p1579_p10, %p1573_p7 }
  0x59   :  { %1583 = shalt.err (!%p1580_p11)
}
  0x5a   :  { %33 = dma.hbm_to_vmem [thread:$0]  %s2021_s0, 2048, %s28_s29, [#allocation3], %s1732_s25, %s1732_s25, %s1733_s26  }
  0x5b   :  { %s1584_s20 = scalar_lea.hbm %s2023_s2, 2048 }
  0x5c   :  { %p1585_p12 = scmp.ne.s32.totalorder %s2023_s2, %s1584_s20  ;;  %p1588_p13 = scmp.lt.u32.totalorder %s1584_s20, %s2023_s2 }
  0x5e   :  { %p1590_p0 = pnand %p1588_p13, %p1585_p12 }
  0x60   :  { %1593 = shalt.err (!%p1590_p0)
}
  0x61   :  { %s1594_s21 = scalar_lea.vmem %s1859_s11, 2048  ;;  %p1599_p2 = scmp.lt.s32.totalorder %s1859_s11, %s1859_s11 }
  0x62   :  { %p1595_p1 = scmp.ne.s32.totalorder %s1859_s11, %s1594_s21  ;;  %p1600_p3 = scmp.lt.s32.totalorder %s1594_s21, %s1594_s21 }
  0x64   :  { %p1601_p4 = por %p1600_p3, %p1599_p2 }
  0x66   :  { %p1602_p5 = pnand %p1601_p4, %p1595_p1 }
  0x68   :  { %1605 = shalt.err (!%p1602_p5)
}
  0x69   :  { %57 = dma.hbm_to_vmem [thread:$0]  %s2023_s2, 2048, %s1859_s11, [#allocation6], %s1732_s25, %s1732_s25, %s1733_s26  }
  0x6a   :  { %s1738_s29 = smov [#allocation10]   ;;  %s1739_s12 = smov [#allocation13]  }
  0x6b   :  { %s73_s30 = sshll.u32 %s1738_s29, 4  ;;  %s95_s3 = sshll.u32 %s1739_s12, 4  ;;  %s74_s30 = int_to_ptr.vmem [resolvable:$true] %s73_s30  ;;  %s1896_s3 = int_to_ptr.vmem [resolvable:$true] %s95_s3 }
  0x6c   :  { %s1606_s15 = scalar_lea.hbm %s2025_s4, 2048 }
  0x6d   :  { %p1607_p6 = scmp.ne.s32.totalorder %s2025_s4, %s1606_s15  ;;  %p1610_p7 = scmp.lt.u32.totalorder %s1606_s15, %s2025_s4 }
  0x6f   :  { %p1612_p8 = pnand %p1610_p7, %p1607_p6 }
  0x71   :  { %1615 = shalt.err (!%p1612_p8)
}
  0x72   :  { %s1616_s2 = scalar_lea.vmem %s74_s30, 2048  ;;  %p1621_p10 = scmp.lt.s32.totalorder %s74_s30, %s74_s30 }
  0x73   :  { %p1617_p9 = scmp.ne.s32.totalorder %s74_s30, %s1616_s2  ;;  %p1622_p11 = scmp.lt.s32.totalorder %s1616_s2, %s1616_s2 }
  0x75   :  { %p1623_p12 = por %p1622_p11, %p1621_p10 }
  0x77   :  { %p1624_p13 = pnand %p1623_p12, %p1617_p9 }
  0x79   :  { %1627 = shalt.err (!%p1624_p13)
}
  0x7a   :  { %79 = dma.hbm_to_vmem [thread:$0]  %s2025_s4, 2048, %s74_s30, [#allocation9], %s1732_s25, %s1732_s25, %s1733_s26  }
  0x7b   :  { %s1628_s20 = scalar_lea.hbm %s2027_s6, 2048 }
  0x7c   :  { %p1629_p0 = scmp.ne.s32.totalorder %s2027_s6, %s1628_s20  ;;  %p1632_p1 = scmp.lt.u32.totalorder %s1628_s20, %s2027_s6 }
  0x7e   :  { %p1634_p2 = pnand %p1632_p1, %p1629_p0 }
  0x80   :  { %1637 = shalt.err (!%p1634_p2)
}
  0x81   :  { %s1638_s21 = scalar_lea.vmem %s1896_s3, 2048  ;;  %p1643_p4 = scmp.lt.s32.totalorder %s1896_s3, %s1896_s3 }
  0x82   :  { %p1639_p3 = scmp.ne.s32.totalorder %s1896_s3, %s1638_s21  ;;  %p1644_p5 = scmp.lt.s32.totalorder %s1638_s21, %s1638_s21 }
  0x84   :  { %p1645_p6 = por %p1644_p5, %p1643_p4 }
  0x86   :  { %p1646_p7 = pnand %p1645_p6, %p1639_p3 }
  0x88   :  { %1649 = shalt.err (!%p1646_p7)
}
  0x89   :  { %101 = dma.hbm_to_vmem [thread:$0]  %s2027_s6, 2048, %s1896_s3, [#allocation12], %s1732_s25, %s1732_s25, %s1733_s26  }
  0x8a   :  { %s1740_s28 = smov [#allocation16]   ;;  %s1741_s30 = smov [#allocation17]  }
  0x8b   :  { %s117_s29 = sshll.u32 %s1740_s28, 4  ;;  %s130_s12 = sshll.u32 %s1741_s30, 4  ;;  %s118_s29 = int_to_ptr.vmem [resolvable:$true] %s117_s29  ;;  %s131_s12 = int_to_ptr.vmem [resolvable:$true] %s130_s12 }
  0x8c   :  { %s1650_s15 = scalar_lea.hbm %s2029_s8, 2048 }
  0x8d   :  { %p1651_p8 = scmp.ne.s32.totalorder %s2029_s8, %s1650_s15  ;;  %p1654_p9 = scmp.lt.u32.totalorder %s1650_s15, %s2029_s8 }
  0x8f   :  { %p1656_p10 = pnand %p1654_p9, %p1651_p8 }
  0x91   :  { %1659 = shalt.err (!%p1656_p10)
}
  0x92   :  { %s1660_s6 = scalar_lea.vmem %s118_s29, 2048  ;;  %p1665_p12 = scmp.lt.s32.totalorder %s118_s29, %s118_s29 }
  0x93   :  { %p1661_p11 = scmp.ne.s32.totalorder %s118_s29, %s1660_s6  ;;  %p1666_p13 = scmp.lt.s32.totalorder %s1660_s6, %s1660_s6 }
  0x95   :  { %p1667_p0 = por %p1666_p13, %p1665_p12 }
  0x97   :  { %p1668_p1 = pnand %p1667_p0, %p1661_p11 }
  0x99   :  { %1671 = shalt.err (!%p1668_p1)
}
  0x9a   :  { %123 = dma.hbm_to_vmem [thread:$0]  %s2029_s8, 2048, %s118_s29, [#allocation15], %s1732_s25, %s1732_s25, %s1733_s26  }
  0x9b   :  { %s1672_s14 = scalar_lea.hbm %s2030_s9, 16 }
  0x9c   :  { %p1673_p2 = scmp.ne.s32.totalorder %s2030_s9, %s1672_s14  ;;  %p1676_p3 = scmp.lt.u32.totalorder %s1672_s14, %s2030_s9 }
  0x9e   :  { %p1678_p4 = pnand %p1676_p3, %p1673_p2 }
  0xa0   :  { %1681 = shalt.err (!%p1678_p4)
}
  0xa1   :  { %s1682_s27 = scalar_lea.vmem %s131_s12, 16  ;;  %s1686_s5 = scalar_lea.vmem %s131_s12, 32 }
  0xa2   :  { %p1683_p5 = scmp.ne.s32.totalorder %s131_s12, %s1682_s27  ;;  %p1687_p6 = scmp.lt.s32.totalorder %s131_s12, %s131_s12 }
  0xa3   :  { %p1688_p7 = scmp.lt.s32.totalorder %s1686_s5, %s1682_s27 }
  0xa5   :  { %p1689_p8 = por %p1688_p7, %p1687_p6 }
  0xa7   :  { %p1690_p9 = pnand %p1689_p8, %p1683_p5 }
  0xa9   :  { %1693 = shalt.err (!%p1690_p9)
}
  0xaa   :  { %133 = dma.hbm_to_vmem [thread:$0]  %s2030_s9, 16, %s131_s12, [#allocation18]  }
  0xab   :  { %1716 = dma.done.wait [#allocation3], 2048  }
  0xac   :  { %1717 = vsyncadd [#allocation3], 4294965248 }
  0xad   :  { %1718 = dma.done.wait [#allocation6], 4096  }
  0xae   :  { %1719 = vsyncadd [#allocation6], 4294963200 }
  0xaf   :  { %1720 = dma.done.wait [#allocation9], 2064  }
  0xb0   :  { %1721 = vsyncadd [#allocation9], 4294965232 }
  0xb1   :  { %1722 = dma.done.wait [#allocation12], 2064  }
  0xb2   :  { %1723 = vsyncadd [#allocation12], 4294965232 }
  0xb3   :  { %1724 = dma.done.wait [#allocation15], 2064  }
  0xb4   :  { %1725 = vsyncadd [#allocation15], 4294965232 }
  0xb5   :  { %1726 = dma.done.wait [#allocation18], 16  }
  0xb6   :  { %1727 = vsyncadd [#allocation18], 4294967280  ;;  %v189_v0 = vld [vmem:[#allocation5] sm:$0xff]  ;;  %v190_v1 = vld [vmem:[#allocation5 + $0x8] sm:$0xff]  ;;  %vm1743_vm0 = vmmov 0   ;;  %s1744_s9 = smov [#allocation19]  }
  0xb7   :  { %v191_v2 = vld [vmem:[#allocation5 + $0x10] sm:$0xff]  ;;  %v205_v3 = vpack.c.bf16 %v190_v1, %v189_v0  ;;  %v192_v4 = vld [vmem:[#allocation5 + $0x18] sm:$0xff]  ;;  %v193_v6 = vld [vmem:[#allocation5 + $0x20] sm:$0xff]  ;;  %s1125_s26 = sshll.u32 %s1744_s9, 4  ;;  %s1126_s26 = int_to_ptr.vmem [resolvable:$true] %s1125_s26 }
  0xb8   :  { %v206_v5 = vpack.c.bf16 %v192_v4, %v191_v2  ;;  %v194_v7 = vld [vmem:[#allocation5 + $0x28] sm:$0xff]  ;;  %v165_v9 = vld [vmem:[#allocation2] sm:$0xff]  ;;  %v195_v11 = vld [vmem:[#allocation5 + $0x30] sm:$0xff]  ;;  %s1694_s21 = scalar_lea.vmem %s1126_s26, 128  ;;  %p1699_p11 = scmp.lt.s32.totalorder %s1126_s26, %s1126_s26 }
  0xb9   :  { %1247 = vmatprep.subr.bf16.mxu0 %v205_v3  ;;  %v207_v8 = vpack.c.bf16 %v194_v7, %v193_v6  ;;  %v166_v10 = vld [vmem:[#allocation2 + $0x8] sm:$0xff]  ;;  %v196_v12 = vld [vmem:[#allocation5 + $0x38] sm:$0xff]  ;;  %v197_v15 = vld [vmem:[#allocation5 + $0x40] sm:$0xff]  ;;  %p1695_p10 = scmp.ne.s32.totalorder %s1126_s26, %s1694_s21  ;;  %p1700_p12 = scmp.lt.s32.totalorder %s1694_s21, %s1694_s21 }
  0xba   :  { %1248 = vmatpush3.bf16.msra.mxu0 %v205_v3  ;;  %v1960_v13 = vpack.c.bf16 %v166_v10, %v165_v9  ;;  %v208_v14 = vpack.c.bf16 %v196_v12, %v195_v11  ;;  %v198_v16 = vld [vmem:[#allocation5 + $0x48] sm:$0xff]  ;;  %v318_v17 = vld [vmem:[#allocation7] sm:$0xff]  ;;  %v320_v19 = vld [vmem:[#allocation7 + $0x10] sm:$0xff] }
  0xbb   :  { %1249 = vmatprep.subr.bf16.mxu0 %v206_v5  ;;  %v319_v18 = vld [vmem:[#allocation7 + $0x8] sm:$0xff]  ;;  %v321_v20 = vld [vmem:[#allocation7 + $0x18] sm:$0xff]  ;;  %v209_v23 = vpack.c.bf16 %v198_v16, %v197_v15  ;;  %v322_v24 = vld [vmem:[#allocation7 + $0x20] sm:$0xff]  ;;  %p1701_p13 = por %p1700_p12, %p1699_p11 }
  0xbc   :  { %1263 = vmatprep.mubr.bf16.mxu0 %v1960_v13  ;;  %v334_v21 = vpack.c.bf16 %v319_v18, %v318_v17  ;;  %v335_v22 = vpack.c.bf16 %v321_v20, %v320_v19  ;;  %v323_v25 = vld [vmem:[#allocation7 + $0x28] sm:$0xff]  ;;  %v199_v26 = vld [vmem:[#allocation5 + $0x50] sm:$0xff]  ;;  %v200_v27 = vld [vmem:[#allocation5 + $0x58] sm:$0xff] }
  0xbd   :  { %v336_v28 = vpack.c.bf16 %v323_v25, %v322_v24  ;;  %v210_v29 = vpack.c.bf16 %v200_v27, %v199_v26  ;;  %v324_v30 = vld [vmem:[#allocation7 + $0x30] sm:$0xff]  ;;  %v325_v31 = vld [vmem:[#allocation7 + $0x38] sm:$0xff]  ;;  %v201_v32 = vld [vmem:[#allocation5 + $0x60] sm:$0xff]  ;;  %p1702_p0 = pnand %p1701_p13, %p1695_p10 }
  0xbe   :  { %1250 = vmatpush3.bf16.msra.mxu0 %v206_v5  ;;  %1279 = vmatprep.subr.bf16.mxu1 %v334_v21  ;;  %v202_v33 = vld [vmem:[#allocation5 + $0x68] sm:$0xff]  ;;  %v337_v34 = vpack.c.bf16 %v325_v31, %v324_v30  ;;  %v326_v36 = vld [vmem:[#allocation7 + $0x40] sm:$0xff]  ;;  %v203_v38 = vld [vmem:[#allocation5 + $0x70] sm:$0xff] }
  0xbf   :  { %1251 = vmatprep.subr.bf16.mxu0 %v207_v8  ;;  %1280 = vmatpush3.bf16.msra.mxu1 %v334_v21  ;;  %v211_v35 = vpack.c.bf16 %v202_v33, %v201_v32  ;;  %v327_v37 = vld [vmem:[#allocation7 + $0x48] sm:$0xff]  ;;  %v204_v39 = vld [vmem:[#allocation5 + $0x78] sm:$0xff]  ;;  %v328_v42 = vld [vmem:[#allocation7 + $0x50] sm:$0xff] }
  0xc0   :  { %1281 = vmatprep.subr.bf16.mxu1 %v335_v22  ;;  %v338_v40 = vpack.c.bf16 %v327_v37, %v326_v36  ;;  %v212_v41 = vpack.c.bf16 %v204_v39, %v203_v38  ;;  %v329_v43 = vld [vmem:[#allocation7 + $0x58] sm:$0xff]  ;;  %v167_v44 = vld [vmem:[#allocation2 + $0x10] sm:$0xff]  ;;  %v169_v46 = vld [vmem:[#allocation2 + $0x20] sm:$0xff] }
  0xc1   :  { %v168_v45 = vld [vmem:[#allocation2 + $0x18] sm:$0xff]  ;;  %v339_v47 = vpack.c.bf16 %v329_v43, %v328_v42  ;;  %v170_v48 = vld [vmem:[#allocation2 + $0x28] sm:$0xff]  ;;  %v330_v49 = vld [vmem:[#allocation7 + $0x60] sm:$0xff] }
  0xc2   :  { %1252 = vmatpush3.bf16.msra.mxu0 %v207_v8  ;;  %v331_v50 = vld [vmem:[#allocation7 + $0x68] sm:$0xff]  ;;  %v1963_v51 = vpack.c.bf16 %v168_v45, %v167_v44  ;;  %v1965_v52 = vpack.c.bf16 %v170_v48, %v169_v46  ;;  %v171_v54 = vld [vmem:[#allocation2 + $0x30] sm:$0xff]  ;;  %v172_v55 = vld [vmem:[#allocation2 + $0x38] sm:$0xff] }
  0xc3   :  { %1253 = vmatprep.subr.bf16.mxu0 %v208_v14  ;;  %1282 = vmatpush3.bf16.msra.mxu1 %v335_v22  ;;  %v340_v53 = vpack.c.bf16 %v331_v50, %v330_v49  ;;  %v173_v56 = vld [vmem:[#allocation2 + $0x40] sm:$0xff]  ;;  %v174_v57 = vld [vmem:[#allocation2 + $0x48] sm:$0xff]  ;;  %v1969_v58 = vpack.c.bf16 %v172_v55, %v171_v54  ;;  %v175_v60 = vld [vmem:[#allocation2 + $0x50] sm:$0xff] }
  0xc4   :  { %1283 = vmatprep.subr.bf16.mxu1 %v336_v28  ;;  %v1971_v59 = vpack.c.bf16 %v174_v57, %v173_v56  ;;  %v176_v61 = vld [vmem:[#allocation2 + $0x58] sm:$0xff]  ;;  %v177_v62 = vld [vmem:[#allocation2 + $0x60] sm:$0xff]  ;;  %v178_v63 = vld [vmem:[#allocation2 + $0x68] sm:$0xff] }
  0xc5   :  { %v1975_v0 = vpack.c.bf16 %v176_v61, %v175_v60  ;;  %v1977_v1 = vpack.c.bf16 %v178_v63, %v177_v62  ;;  %v179_v2 = vld [vmem:[#allocation2 + $0x70] sm:$0xff]  ;;  %v180_v3 = vld [vmem:[#allocation2 + $0x78] sm:$0xff]  ;;  %v575_v33 = vld [vmem:[#allocation10] sm:$0xff] }
  0xc6   :  { %1254 = vmatpush3.bf16.msra.mxu0 %v208_v14  ;;  %v1981_v4 = vpack.c.bf16 %v180_v3, %v179_v2  ;;  %v332_v5 = vld [vmem:[#allocation7 + $0x70] sm:$0xff]  ;;  %v333_v6 = vld [vmem:[#allocation7 + $0x78] sm:$0xff]  ;;  %v579_v39 = vld [vmem:[#allocation10 + $0x20] sm:$0xff] }
  0xc7   :  { %1255 = vmatprep.subr.bf16.mxu0 %v209_v23  ;;  %1284 = vmatpush3.bf16.msra.mxu1 %v336_v28  ;;  %v341_v7 = vpack.c.bf16 %v333_v6, %v332_v5  ;;  %v578_v37 = vld [vmem:[#allocation10 + $0x18] sm:$0xff]  ;;  %v581_v42 = vld [vmem:[#allocation10 + $0x30] sm:$0xff]  ;;  %v583_v45 = vld [vmem:[#allocation10 + $0x40] sm:$0xff] }
  0xc8   :  { %1285 = vmatprep.subr.bf16.mxu1 %v337_v34  ;;  %v582_v43 = vld [vmem:[#allocation10 + $0x38] sm:$0xff]  ;;  %v584_v46 = vld [vmem:[#allocation10 + $0x48] sm:$0xff]  ;;  %v585_v48 = vld [vmem:[#allocation10 + $0x50] sm:$0xff] }
  0xc9   :  { %v594_v44 = vpack.c.bf16 %v582_v43, %v581_v42  ;;  %v586_v49 = vld [vmem:[#allocation10 + $0x58] sm:$0xff]  ;;  %v588_v54 = vld [vmem:[#allocation10 + $0x68] sm:$0xff] }
  0xca   :  { %1256 = vmatpush3.bf16.msra.mxu0 %v209_v23  ;;  %v596_v50 = vpack.c.bf16 %v586_v49, %v585_v48  ;;  %v1139_v56 = vld [vmem:[#allocation8] ss:$0 sm:$0xff] }
  0xcb   :  { %1257 = vmatprep.subr.bf16.mxu0 %v210_v29  ;;  %1286 = vmatpush3.bf16.msra.mxu1 %v337_v34  ;;  %v576_v34 = vld [vmem:[#allocation10 + $0x8] sm:$0xff] }
  0xcc   :  { %1287 = vmatprep.subr.bf16.mxu1 %v338_v40  ;;  %v591_v36 = vpack.c.bf16 %v576_v34, %v575_v33 }
  0xce   :  { %1258 = vmatpush3.bf16.msra.mxu0 %v210_v29 }
  0xcf   :  { %1259 = vmatprep.subr.bf16.mxu0 %v211_v35  ;;  %1288 = vmatpush3.bf16.msra.mxu1 %v338_v40  ;;  %v580_v40 = vld [vmem:[#allocation10 + $0x28] sm:$0xff] }
  0xd0   :  { %1289 = vmatprep.subr.bf16.mxu1 %v339_v47 }
  0xd2   :  { %1260 = vmatpush3.bf16.msra.mxu0 %v211_v35  ;;  %v577_v35 = vld [vmem:[#allocation10 + $0x10] sm:$0xff] }
  0xd3   :  { %1261 = vmatprep.subr.bf16.mxu0 %v212_v41  ;;  %1290 = vmatpush3.bf16.msra.mxu1 %v339_v47  ;;  %v592_v38 = vpack.c.bf16 %v578_v37, %v577_v35  ;;  %v595_v47 = vpack.c.bf16 %v584_v46, %v583_v45 }
  0xd4   :  { %1291 = vmatprep.subr.bf16.mxu1 %v340_v53 }
  0xd6   :  { %1262 = vmatpush3.bf16.msra.mxu0 %v212_v41  ;;  %v593_v41 = vpack.c.bf16 %v580_v40, %v579_v39 }
  0xd7   :  { %1292 = vmatpush3.bf16.msra.mxu1 %v340_v53  ;;  %v587_v53 = vld [vmem:[#allocation10 + $0x60] sm:$0xff] }
  0xd8   :  { %1293 = vmatprep.subr.bf16.mxu1 %v341_v7  ;;  %v597_v55 = vpack.c.bf16 %v588_v54, %v587_v53 }
  0xd9   :  { %1264 = vmatmul.mubr.bf16.vlgmr.msra.gmra.mrb[0].mxu0 %v1963_v51 }
  0xda   :  { %1267 = vmatprep.mubr.bf16.mxu0 %v1965_v52 }
  0xdb   :  { %1294 = vmatpush3.bf16.msra.mxu1 %v341_v7 }
  0xdc   :  { %1343 = vmatprep.subr.bf16.mxu1 %v591_v36 }
  0xe1   :  { %1268 = vmatmul.mubr.bf16.gmra.mrb[4].mxu0 %v1969_v58 }
  0xe2   :  { %1271 = vmatprep.mubr.bf16.mxu0 %v1971_v59 }
  0xe9   :  { %1272 = vmatmul.mubr.bf16.gmra.mrb[8].mxu0 %v1975_v0 }
  0xea   :  { %1275 = vmatprep.mubr.bf16.mxu0 %v1977_v1 }
  0xf1   :  { %1276 = vmatmul.mubr.bf16.gmra.mrb[12].mxu0 %v1981_v4 }
  0xf2   :  { %1327 = vmatprep.mubr.bf16.mxu0 %v1960_v13 }
 0x1ac   :  { %v1265_v8 = vpop.f32.mrb[0].mxu0 }
 0x1ad   :  { %v247_v9 = vpop.f32.mrb[1].mxu0 }
 0x1ae   :  { %v1266_v10 = vpop.f32.mrb[2].mxu0 }
 0x1af   :  { %v311_v11 = vpack.c.bf16 %v1266_v10, %v1265_v8  ;;  %v250_v12 = vpop.f32.mrb[3].mxu0 }
 0x1b0   :  { %v310_v14 = vpack.c.bf16 %v250_v12, %v247_v9 }
 0x1b2   :  { %1295 = vmatprep.mubr.bf16.mxu1 %v310_v14 }
 0x1b3   :  { %1296 = vmatmul.mubr.bf16.vlgmr.msra.gmra.mrb[0].mxu1 %v311_v11 }
 0x1b4   :  { %v1269_v15 = vpop.f32.mrb[4].mxu0  ;;  %1344 = vmatpush3.bf16.msra.mxu1 %v591_v36 }
 0x1b5   :  { %v263_v16 = vpop.f32.mrb[5].mxu0  ;;  %1345 = vmatprep.subr.bf16.mxu1 %v592_v38 }
 0x1b6   :  { %v1270_v17 = vpop.f32.mrb[6].mxu0 }
 0x1b7   :  { %v313_v18 = vpack.c.bf16 %v1270_v17, %v1269_v15  ;;  %v266_v19 = vpop.f32.mrb[7].mxu0 }
 0x1b8   :  { %v312_v20 = vpack.c.bf16 %v266_v19, %v263_v16  ;;  %1346 = vmatpush3.bf16.msra.mxu1 %v592_v38 }
 0x1b9   :  { %1347 = vmatprep.subr.bf16.mxu1 %v593_v41 }
 0x1ba   :  { %1299 = vmatprep.mubr.bf16.mxu1 %v312_v20 }
 0x1bb   :  { %1300 = vmatmul.mubr.bf16.gmra.mrb[4].mxu1 %v313_v18 }
 0x1bc   :  { %v1273_v21 = vpop.f32.mrb[8].mxu0  ;;  %1348 = vmatpush3.bf16.msra.mxu1 %v593_v41 }
 0x1bd   :  { %v279_v22 = vpop.f32.mrb[9].mxu0  ;;  %1349 = vmatprep.subr.bf16.mxu1 %v594_v44 }
 0x1be   :  { %v1274_v23 = vpop.f32.mrb[10].mxu0 }
 0x1bf   :  { %v315_v24 = vpack.c.bf16 %v1274_v23, %v1273_v21  ;;  %v282_v25 = vpop.f32.mrb[11].mxu0 }
 0x1c0   :  { %v314_v26 = vpack.c.bf16 %v282_v25, %v279_v22  ;;  %1350 = vmatpush3.bf16.msra.mxu1 %v594_v44 }
 0x1c1   :  { %1351 = vmatprep.subr.bf16.mxu1 %v595_v47 }
 0x1c2   :  { %1303 = vmatprep.mubr.bf16.mxu1 %v314_v26 }
 0x1c3   :  { %1304 = vmatmul.mubr.bf16.gmra.mrb[8].mxu1 %v315_v24 }
 0x1c4   :  { %v1277_v27 = vpop.f32.mrb[12].mxu0  ;;  %1352 = vmatpush3.bf16.msra.mxu1 %v595_v47 }
 0x1c5   :  { %v295_v28 = vpop.f32.mrb[13].mxu0  ;;  %1353 = vmatprep.subr.bf16.mxu1 %v596_v50 }
 0x1c6   :  { %v1278_v29 = vpop.f32.mrb[14].mxu0 }
 0x1c7   :  { %v317_v30 = vpack.c.bf16 %v1278_v29, %v1277_v27  ;;  %v298_v31 = vpop.f32.mrb[15].mxu0 }
 0x1c8   :  { %v316_v32 = vpack.c.bf16 %v298_v31, %v295_v28  ;;  %1354 = vmatpush3.bf16.msra.mxu1 %v596_v50 }
 0x1c9   :  { %1355 = vmatprep.subr.bf16.mxu1 %v597_v55 }
 0x1ca   :  { %1307 = vmatprep.mubr.bf16.mxu1 %v316_v32 }
 0x1cb   :  { %1308 = vmatmul.mubr.bf16.gmra.mrb[12].mxu1 %v317_v30 }
 0x1cc   :  { %1356 = vmatpush3.bf16.msra.mxu1 %v597_v55 }
 0x286   :  { %v1297_v57 = vpop.f32.mrb[0].mxu1 }
 0x287   :  { %v392_v60 = vadd.f32 %v1297_v57, %v1139_v56  ;;  %v383_v61 = vpop.f32.mrb[1].mxu1 }
 0x288   :  { %v384_v62 = vadd.f32 %v1139_v56, %v383_v61  ;;  %v1298_v63 = vpop.f32.mrb[2].mxu1 }
 0x289   :  { %v395_v2 = vadd.f32 %v1298_v63, %v1139_v56  ;;  %v386_v3 = vpop.f32.mrb[3].mxu1  ;;  %v448_v6 = vmax.f32 %v392_v60, 0.0  ;;  %v590_v60 = vld [vmem:[#allocation10 + $0x78] sm:$0xff] }
 0x28a   :  { %v387_v5 = vadd.f32 %v1139_v56, %v386_v3  ;;  %v446_v8 = vmax.f32 %v384_v62, 0.0 }
 0x28b   :  { %v449_v7 = vmax.f32 %v395_v2, 0.0 }
 0x28c   :  { %v447_v9 = vmax.f32 %v387_v5, 0.0 }
 0x28d   :  { %v463_v10 = vpack.c.bf16 %v449_v7, %v448_v6 }
 0x28e   :  { %v462_v11 = vpack.c.bf16 %v447_v9, %v446_v8  ;;  %v1301_v12 = vpop.f32.mrb[4].mxu1 }
 0x28f   :  { %v408_v14 = vadd.f32 %v1301_v12, %v1139_v56  ;;  %v399_v15 = vpop.f32.mrb[5].mxu1 }
 0x290   :  { %v400_v16 = vadd.f32 %v1139_v56, %v399_v15  ;;  %v1302_v17 = vpop.f32.mrb[6].mxu1  ;;  %1311 = vmatprep.subr.bf16.mxu0 %v462_v11 }
 0x291   :  { %v411_v18 = vadd.f32 %v1302_v17, %v1139_v56  ;;  %v402_v19 = vpop.f32.mrb[7].mxu1  ;;  %1312 = vmatpush3.bf16.msra.mxu0 %v462_v11  ;;  %v452_v21 = vmax.f32 %v408_v14, 0.0 }
 0x292   :  { %v403_v20 = vadd.f32 %v1139_v56, %v402_v19  ;;  %1313 = vmatprep.subr.bf16.mxu0 %v463_v10  ;;  %v450_v23 = vmax.f32 %v400_v16, 0.0 }
 0x293   :  { %v453_v22 = vmax.f32 %v411_v18, 0.0 }
 0x294   :  { %v451_v24 = vmax.f32 %v403_v20, 0.0 }
 0x295   :  { %v465_v25 = vpack.c.bf16 %v453_v22, %v452_v21  ;;  %1314 = vmatpush3.bf16.msra.mxu0 %v463_v10 }
 0x296   :  { %v464_v26 = vpack.c.bf16 %v451_v24, %v450_v23  ;;  %v1305_v27 = vpop.f32.mrb[8].mxu1 }
 0x297   :  { %v424_v28 = vadd.f32 %v1305_v27, %v1139_v56  ;;  %v415_v29 = vpop.f32.mrb[9].mxu1  ;;  %v834_v27 = vld [vmem:[#allocation13 + $0x10] sm:$0xff] }
 0x298   :  { %v416_v30 = vadd.f32 %v1139_v56, %v415_v29  ;;  %v1306_v31 = vpop.f32.mrb[10].mxu1  ;;  %1315 = vmatprep.subr.bf16.mxu0 %v464_v26  ;;  %v835_v29 = vld [vmem:[#allocation13 + $0x18] sm:$0xff] }
 0x299   :  { %v427_v32 = vadd.f32 %v1306_v31, %v1139_v56  ;;  %v418_v33 = vpop.f32.mrb[11].mxu1  ;;  %1316 = vmatpush3.bf16.msra.mxu0 %v464_v26  ;;  %v456_v35 = vmax.f32 %v424_v28, 0.0  ;;  %v833_v26 = vld [vmem:[#allocation13 + $0x8] sm:$0xff]  ;;  %v836_v31 = vld [vmem:[#allocation13 + $0x20] sm:$0xff] }
 0x29a   :  { %v419_v34 = vadd.f32 %v1139_v56, %v418_v33  ;;  %1317 = vmatprep.subr.bf16.mxu0 %v465_v25  ;;  %v454_v37 = vmax.f32 %v416_v30, 0.0  ;;  %v849_v30 = vpack.c.bf16 %v835_v29, %v834_v27 }
 0x29b   :  { %v457_v36 = vmax.f32 %v427_v32, 0.0  ;;  %v837_v32 = vld [vmem:[#allocation13 + $0x28] sm:$0xff] }
 0x29c   :  { %v455_v38 = vmax.f32 %v419_v34, 0.0  ;;  %v850_v33 = vpack.c.bf16 %v837_v32, %v836_v31  ;;  %v838_v34 = vld [vmem:[#allocation13 + $0x30] sm:$0xff] }
 0x29d   :  { %v467_v39 = vpack.c.bf16 %v457_v36, %v456_v35  ;;  %1318 = vmatpush3.bf16.msra.mxu0 %v465_v25  ;;  %v832_v25 = vld [vmem:[#allocation13] sm:$0xff]  ;;  %v839_v35 = vld [vmem:[#allocation13 + $0x38] sm:$0xff] }
 0x29e   :  { %v466_v40 = vpack.c.bf16 %v455_v38, %v454_v37  ;;  %v1309_v41 = vpop.f32.mrb[12].mxu1  ;;  %v848_v28 = vpack.c.bf16 %v833_v26, %v832_v25  ;;  %v851_v36 = vpack.c.bf16 %v839_v35, %v838_v34  ;;  %v840_v37 = vld [vmem:[#allocation13 + $0x40] sm:$0xff]  ;;  %v841_v38 = vld [vmem:[#allocation13 + $0x48] sm:$0xff] }
 0x29f   :  { %v440_v42 = vadd.f32 %v1309_v41, %v1139_v56  ;;  %v431_v43 = vpop.f32.mrb[13].mxu1  ;;  %v843_v41 = vld [vmem:[#allocation13 + $0x58] sm:$0xff] }
 0x2a0   :  { %v432_v44 = vadd.f32 %v1139_v56, %v431_v43  ;;  %v1310_v45 = vpop.f32.mrb[14].mxu1  ;;  %1319 = vmatprep.subr.bf16.mxu0 %v466_v40  ;;  %v844_v43 = vld [vmem:[#allocation13 + $0x60] sm:$0xff] }
 0x2a1   :  { %v443_v46 = vadd.f32 %v1310_v45, %v1139_v56  ;;  %v434_v47 = vpop.f32.mrb[15].mxu1  ;;  %1320 = vmatpush3.bf16.msra.mxu0 %v466_v40  ;;  %v460_v49 = vmax.f32 %v440_v42, 0.0  ;;  %v842_v40 = vld [vmem:[#allocation13 + $0x50] sm:$0xff] }
 0x2a2   :  { %v435_v48 = vadd.f32 %v1139_v56, %v434_v47  ;;  %1321 = vmatprep.subr.bf16.mxu0 %v467_v39  ;;  %v458_v53 = vmax.f32 %v432_v44, 0.0  ;;  %v589_v56 = vld [vmem:[#allocation10 + $0x70] sm:$0xff]  ;;  %v853_v42 = vpack.c.bf16 %v843_v41, %v842_v40 }
 0x2a3   :  { %v461_v50 = vmax.f32 %v443_v46, 0.0  ;;  %v598_v61 = vpack.c.bf16 %v590_v60, %v589_v56  ;;  %v845_v44 = vld [vmem:[#allocation13 + $0x68] sm:$0xff]  ;;  %v1140_v46 = vld [vmem:[#allocation11] ss:$0 sm:$0xff] }
 0x2a4   :  { %v459_v54 = vmax.f32 %v435_v48, 0.0  ;;  %v854_v45 = vpack.c.bf16 %v845_v44, %v844_v43 }
 0x2a5   :  { %v469_v55 = vpack.c.bf16 %v461_v50, %v460_v49  ;;  %1322 = vmatpush3.bf16.msra.mxu0 %v467_v39  ;;  %1357 = vmatprep.subr.bf16.mxu1 %v598_v61  ;;  %v852_v39 = vpack.c.bf16 %v841_v38, %v840_v37 }
 0x2a6   :  { %v468_v57 = vpack.c.bf16 %v459_v54, %v458_v53  ;;  %1358 = vmatpush3.bf16.msra.mxu1 %v598_v61 }
 0x2a7   :  { %1407 = vmatprep.subr.bf16.mxu1 %v848_v28 }
 0x2a8   :  { %1323 = vmatprep.subr.bf16.mxu0 %v468_v57 }
 0x2a9   :  { %1324 = vmatpush3.bf16.msra.mxu0 %v468_v57 }
 0x2aa   :  { %1325 = vmatprep.subr.bf16.mxu0 %v469_v55 }
 0x2ad   :  { %1326 = vmatpush3.bf16.msra.mxu0 %v469_v55 }
 0x2b0   :  { %1328 = vmatmul.mubr.bf16.vlgmr.msra.gmra.mrb[16].mxu0 %v1963_v51 }
 0x2b1   :  { %1331 = vmatprep.mubr.bf16.mxu0 %v1965_v52 }
 0x2b8   :  { %1332 = vmatmul.mubr.bf16.gmra.mrb[20].mxu0 %v1969_v58 }
 0x2b9   :  { %1335 = vmatprep.mubr.bf16.mxu0 %v1971_v59 }
 0x2c0   :  { %1336 = vmatmul.mubr.bf16.gmra.mrb[24].mxu0 %v1975_v0 }
 0x2c1   :  { %1339 = vmatprep.mubr.bf16.mxu0 %v1977_v1 }
 0x2c8   :  { %1340 = vmatmul.mubr.bf16.gmra.mrb[28].mxu0 %v1981_v4 }
 0x2c9   :  { %1391 = vmatprep.mubr.bf16.mxu0 %v1960_v13 }
 0x383   :  { %v1329_v62 = vpop.f32.mrb[16].mxu0 }
 0x384   :  { %v504_v63 = vpop.f32.mrb[17].mxu0 }
 0x385   :  { %v1330_v2 = vpop.f32.mrb[18].mxu0 }
 0x386   :  { %v568_v3 = vpack.c.bf16 %v1330_v2, %v1329_v62  ;;  %v507_v5 = vpop.f32.mrb[19].mxu0 }
 0x387   :  { %v567_v6 = vpack.c.bf16 %v507_v5, %v504_v63 }
 0x389   :  { %1359 = vmatprep.mubr.bf16.mxu1 %v567_v6 }
 0x38a   :  { %1360 = vmatmul.mubr.bf16.vlgmr.msra.gmra.mrb[16].mxu1 %v568_v3 }
 0x38b   :  { %v1333_v7 = vpop.f32.mrb[20].mxu0  ;;  %1408 = vmatpush3.bf16.msra.mxu1 %v848_v28 }
 0x38c   :  { %v520_v8 = vpop.f32.mrb[21].mxu0  ;;  %1409 = vmatprep.subr.bf16.mxu1 %v849_v30 }
 0x38d   :  { %v1334_v9 = vpop.f32.mrb[22].mxu0 }
 0x38e   :  { %v570_v10 = vpack.c.bf16 %v1334_v9, %v1333_v7  ;;  %v523_v11 = vpop.f32.mrb[23].mxu0 }
 0x38f   :  { %v569_v12 = vpack.c.bf16 %v523_v11, %v520_v8  ;;  %1410 = vmatpush3.bf16.msra.mxu1 %v849_v30 }
 0x390   :  { %1411 = vmatprep.subr.bf16.mxu1 %v850_v33 }
 0x391   :  { %1363 = vmatprep.mubr.bf16.mxu1 %v569_v12 }
 0x392   :  { %1364 = vmatmul.mubr.bf16.gmra.mrb[20].mxu1 %v570_v10 }
 0x393   :  { %v1337_v13 = vpop.f32.mrb[24].mxu0  ;;  %1412 = vmatpush3.bf16.msra.mxu1 %v850_v33 }
 0x394   :  { %v536_v14 = vpop.f32.mrb[25].mxu0  ;;  %1413 = vmatprep.subr.bf16.mxu1 %v851_v36 }
 0x395   :  { %v1338_v15 = vpop.f32.mrb[26].mxu0 }
 0x396   :  { %v572_v16 = vpack.c.bf16 %v1338_v15, %v1337_v13  ;;  %v539_v17 = vpop.f32.mrb[27].mxu0 }
 0x397   :  { %v571_v18 = vpack.c.bf16 %v539_v17, %v536_v14  ;;  %1414 = vmatpush3.bf16.msra.mxu1 %v851_v36 }
 0x398   :  { %1415 = vmatprep.subr.bf16.mxu1 %v852_v39 }
 0x399   :  { %1367 = vmatprep.mubr.bf16.mxu1 %v571_v18 }
 0x39a   :  { %1368 = vmatmul.mubr.bf16.gmra.mrb[24].mxu1 %v572_v16 }
 0x39b   :  { %v1341_v19 = vpop.f32.mrb[28].mxu0  ;;  %1416 = vmatpush3.bf16.msra.mxu1 %v852_v39 }
 0x39c   :  { %v552_v20 = vpop.f32.mrb[29].mxu0  ;;  %1417 = vmatprep.subr.bf16.mxu1 %v853_v42 }
 0x39d   :  { %v1342_v21 = vpop.f32.mrb[30].mxu0 }
 0x39e   :  { %v574_v22 = vpack.c.bf16 %v1342_v21, %v1341_v19  ;;  %v555_v23 = vpop.f32.mrb[31].mxu0 }
 0x39f   :  { %v573_v24 = vpack.c.bf16 %v555_v23, %v552_v20  ;;  %1418 = vmatpush3.bf16.msra.mxu1 %v853_v42 }
 0x3a0   :  { %1419 = vmatprep.subr.bf16.mxu1 %v854_v45 }
 0x3a1   :  { %1371 = vmatprep.mubr.bf16.mxu1 %v573_v24 }
 0x3a2   :  { %1372 = vmatmul.mubr.bf16.gmra.mrb[28].mxu1 %v574_v22 }
 0x3a3   :  { %1420 = vmatpush3.bf16.msra.mxu1 %v854_v45 }
 0x45d   :  { %v1361_v47 = vpop.f32.mrb[16].mxu1 }
 0x45e   :  { %v649_v48 = vadd.f32 %v1361_v47, %v1140_v46  ;;  %v640_v49 = vpop.f32.mrb[17].mxu1  ;;  %v847_v47 = vld [vmem:[#allocation13 + $0x78] sm:$0xff] }
 0x45f   :  { %v641_v50 = vadd.f32 %v1140_v46, %v640_v49  ;;  %v1362_v53 = vpop.f32.mrb[18].mxu1  ;;  %v1049_v49 = vld [vmem:[#allocation16] sm:$0xff] }
 0x460   :  { %v652_v54 = vadd.f32 %v1362_v53, %v1140_v46  ;;  %v643_v55 = vpop.f32.mrb[19].mxu1  ;;  %v705_v56 = vmax.f32 %v649_v48, 0.0  ;;  %v1742_v53 = vmov 0.0  }
 0x461   :  { %v644_v57 = vadd.f32 %v1140_v46, %v643_v55  ;;  %v703_v61 = vmax.f32 %v641_v50, 0.0  ;;  %v1050_v50 = vld [vmem:[#allocation16 + $0x8] sm:$0xff] }
 0x462   :  { %v706_v60 = vmax.f32 %v652_v54, 0.0 }
 0x463   :  { %v704_v62 = vmax.f32 %v644_v57, 0.0 }
 0x464   :  { %v720_v63 = vpack.c.bf16 %v706_v60, %v705_v56 }
 0x465   :  { %v719_v2 = vpack.c.bf16 %v704_v62, %v703_v61  ;;  %v1365_v3 = vpop.f32.mrb[20].mxu1 }
 0x466   :  { %v665_v5 = vadd.f32 %v1365_v3, %v1140_v46  ;;  %v656_v6 = vpop.f32.mrb[21].mxu1 }
 0x467   :  { %v657_v7 = vadd.f32 %v1140_v46, %v656_v6  ;;  %v1366_v8 = vpop.f32.mrb[22].mxu1  ;;  %1375 = vmatprep.subr.bf16.mxu0 %v719_v2 }
 0x468   :  { %v668_v9 = vadd.f32 %v1366_v8, %v1140_v46  ;;  %v659_v10 = vpop.f32.mrb[23].mxu1  ;;  %1376 = vmatpush3.bf16.msra.mxu0 %v719_v2  ;;  %v709_v12 = vmax.f32 %v665_v5, 0.0  ;;  %v1056_v8 = vld [vmem:[#allocation16 + $0x38] sm:$0xff] }
 0x469   :  { %v660_v11 = vadd.f32 %v1140_v46, %v659_v10  ;;  %1377 = vmatprep.subr.bf16.mxu0 %v720_v63  ;;  %v707_v14 = vmax.f32 %v657_v7, 0.0  ;;  %v1055_v7 = vld [vmem:[#allocation16 + $0x30] sm:$0xff] }
 0x46a   :  { %v710_v13 = vmax.f32 %v668_v9, 0.0  ;;  %v1068_v9 = vpack.c.bf16 %v1056_v8, %v1055_v7 }
 0x46b   :  { %v708_v15 = vmax.f32 %v660_v11, 0.0 }
 0x46c   :  { %v722_v16 = vpack.c.bf16 %v710_v13, %v709_v12  ;;  %1378 = vmatpush3.bf16.msra.mxu0 %v720_v63  ;;  %v1057_v12 = vld [vmem:[#allocation16 + $0x40] sm:$0xff]  ;;  %v1058_v13 = vld [vmem:[#allocation16 + $0x48] sm:$0xff] }
 0x46d   :  { %v721_v17 = vpack.c.bf16 %v708_v15, %v707_v14  ;;  %v1369_v18 = vpop.f32.mrb[24].mxu1  ;;  %v1069_v15 = vpack.c.bf16 %v1058_v13, %v1057_v12 }
 0x46e   :  { %v681_v19 = vadd.f32 %v1369_v18, %v1140_v46  ;;  %v672_v20 = vpop.f32.mrb[25].mxu1 }
 0x46f   :  { %v673_v21 = vadd.f32 %v1140_v46, %v672_v20  ;;  %v1370_v22 = vpop.f32.mrb[26].mxu1  ;;  %1379 = vmatprep.subr.bf16.mxu0 %v721_v17  ;;  %v1060_v20 = vld [vmem:[#allocation16 + $0x58] sm:$0xff] }
 0x470   :  { %v684_v23 = vadd.f32 %v1370_v22, %v1140_v46  ;;  %v675_v24 = vpop.f32.mrb[27].mxu1  ;;  %1380 = vmatpush3.bf16.msra.mxu0 %v721_v17  ;;  %v713_v26 = vmax.f32 %v681_v19, 0.0  ;;  %v1059_v19 = vld [vmem:[#allocation16 + $0x50] sm:$0xff] }
 0x471   :  { %v676_v25 = vadd.f32 %v1140_v46, %v675_v24  ;;  %1381 = vmatprep.subr.bf16.mxu0 %v722_v16  ;;  %v711_v28 = vmax.f32 %v673_v21, 0.0  ;;  %v1070_v21 = vpack.c.bf16 %v1060_v20, %v1059_v19  ;;  %v1061_v24 = vld [vmem:[#allocation16 + $0x60] sm:$0xff] }
 0x472   :  { %v714_v27 = vmax.f32 %v684_v23, 0.0 }
 0x473   :  { %v712_v29 = vmax.f32 %v676_v25, 0.0  ;;  %v1062_v25 = vld [vmem:[#allocation16 + $0x68] sm:$0xff] }
 0x474   :  { %v724_v30 = vpack.c.bf16 %v714_v27, %v713_v26  ;;  %1382 = vmatpush3.bf16.msra.mxu0 %v722_v16  ;;  %v1071_v27 = vpack.c.bf16 %v1062_v25, %v1061_v24 }
 0x475   :  { %v723_v31 = vpack.c.bf16 %v712_v29, %v711_v28  ;;  %v1373_v32 = vpop.f32.mrb[28].mxu1 }
 0x476   :  { %v697_v33 = vadd.f32 %v1373_v32, %v1140_v46  ;;  %v688_v34 = vpop.f32.mrb[29].mxu1  ;;  %v1064_v32 = vld [vmem:[#allocation16 + $0x78] sm:$0xff] }
 0x477   :  { %v689_v35 = vadd.f32 %v1140_v46, %v688_v34  ;;  %v1374_v36 = vpop.f32.mrb[30].mxu1  ;;  %1383 = vmatprep.subr.bf16.mxu0 %v723_v31  ;;  %v1141_v34 = vld [vmem:[#allocation14] ss:$0 sm:$0xff] }
 0x478   :  { %v700_v37 = vadd.f32 %v1374_v36, %v1140_v46  ;;  %v691_v38 = vpop.f32.mrb[31].mxu1  ;;  %1384 = vmatpush3.bf16.msra.mxu0 %v723_v31  ;;  %v717_v40 = vmax.f32 %v697_v33, 0.0  ;;  %v1063_v31 = vld [vmem:[#allocation16 + $0x70] sm:$0xff] }
 0x479   :  { %v692_v39 = vadd.f32 %v1140_v46, %v691_v38  ;;  %1385 = vmatprep.subr.bf16.mxu0 %v724_v30  ;;  %v715_v42 = vmax.f32 %v689_v35, 0.0  ;;  %v846_v46 = vld [vmem:[#allocation13 + $0x70] sm:$0xff]  ;;  %v1072_v33 = vpack.c.bf16 %v1064_v32, %v1063_v31 }
 0x47a   :  { %v718_v41 = vmax.f32 %v700_v37, 0.0  ;;  %v855_v48 = vpack.c.bf16 %v847_v47, %v846_v46 }
 0x47b   :  { %v716_v43 = vmax.f32 %v692_v39, 0.0 }
 0x47c   :  { %v726_v44 = vpack.c.bf16 %v718_v41, %v717_v40  ;;  %1386 = vmatpush3.bf16.msra.mxu0 %v724_v30  ;;  %1421 = vmatprep.subr.bf16.mxu1 %v855_v48 }
 0x47d   :  { %v725_v45 = vpack.c.bf16 %v716_v43, %v715_v42  ;;  %1422 = vmatpush3.bf16.msra.mxu1 %v855_v48 }
 0x47f   :  { %1387 = vmatprep.subr.bf16.mxu0 %v725_v45 }
 0x480   :  { %1388 = vmatpush3.bf16.msra.mxu0 %v725_v45 }
 0x481   :  { %1389 = vmatprep.subr.bf16.mxu0 %v726_v44 }
 0x484   :  { %1390 = vmatpush3.bf16.msra.mxu0 %v726_v44 }
 0x485   :  { %1439 = vmatprep.subr.bf16.mxu0 %v1742_v53 }
 0x487   :  { %1392 = vmatmul.mubr.bf16.vlgmr.msra.gmra.mrb[32].mxu0 %v1963_v51  ;;  %v1051_v51 = vld [vmem:[#allocation16 + $0x10] sm:$0xff] }
 0x488   :  { %1395 = vmatprep.mubr.bf16.mxu0 %v1965_v52  ;;  %v1065_v52 = vpack.c.bf16 %v1050_v50, %v1049_v49 }
 0x48a   :  { %1440 = vmatpush3.bf16.msra.mxu0 %v1065_v52 }
 0x48b   :  { %1441 = vmatprep.subr.bf16.mxu0 %v1742_v53 }
 0x48f   :  { %1396 = vmatmul.mubr.bf16.gmra.mrb[36].mxu0 %v1969_v58  ;;  %v1052_v58 = vld [vmem:[#allocation16 + $0x18] sm:$0xff] }
 0x490   :  { %1399 = vmatprep.mubr.bf16.mxu0 %v1971_v59  ;;  %v1066_v59 = vpack.c.bf16 %v1052_v58, %v1051_v51 }
 0x492   :  { %1442 = vmatpush3.bf16.msra.mxu0 %v1066_v59 }
 0x493   :  { %1443 = vmatprep.subr.bf16.mxu0 %v1742_v53 }
 0x497   :  { %1400 = vmatmul.mubr.bf16.gmra.mrb[40].mxu0 %v1975_v0  ;;  %v1053_v0 = vld [vmem:[#allocation16 + $0x20] sm:$0xff] }
 0x498   :  { %1403 = vmatprep.mubr.bf16.mxu0 %v1977_v1  ;;  %v1054_v1 = vld [vmem:[#allocation16 + $0x28] sm:$0xff] }
 0x49f   :  { %1404 = vmatmul.mubr.bf16.gmra.mrb[44].mxu0 %v1981_v4  ;;  %v1067_v4 = vpack.c.bf16 %v1054_v1, %v1053_v0 }
 0x4a0   :  { %1455 = vmatprep.mubr.msk.bf16.mxu0 %vm1743_vm0, %v1742_v53 }
 0x4a1   :  { %1444 = vmatpush3.bf16.msra.mxu0 %v1067_v4 }
 0x4a2   :  { %1445 = vmatprep.subr.bf16.mxu0 %v1742_v53 }
 0x4a5   :  { %1446 = vmatpush3.bf16.msra.mxu0 %v1068_v9 }
 0x4a6   :  { %1447 = vmatprep.subr.bf16.mxu0 %v1742_v53 }
 0x4a9   :  { %1448 = vmatpush3.bf16.msra.mxu0 %v1069_v15 }
 0x4aa   :  { %1449 = vmatprep.subr.bf16.mxu0 %v1742_v53 }
 0x4ad   :  { %1450 = vmatpush3.bf16.msra.mxu0 %v1070_v21 }
 0x4ae   :  { %1451 = vmatprep.subr.bf16.mxu0 %v1742_v53 }
 0x4b1   :  { %1452 = vmatpush3.bf16.msra.mxu0 %v1071_v27 }
 0x4b2   :  { %1453 = vmatprep.subr.bf16.mxu0 %v1742_v53 }
 0x4b5   :  { %1454 = vmatpush3.bf16.msra.mxu0 %v1072_v33 }
 0x55a   :  { %v1393_v54 = vpop.f32.mrb[32].mxu0 }
 0x55b   :  { %v761_v55 = vpop.f32.mrb[33].mxu0 }
 0x55c   :  { %v1394_v57 = vpop.f32.mrb[34].mxu0 }
 0x55d   :  { %v825_v56 = vpack.c.bf16 %v1394_v57, %v1393_v54  ;;  %v764_v60 = vpop.f32.mrb[35].mxu0  ;;  %v1114_v57 = vlaneseq }
 0x55e   :  { %v824_v61 = vpack.c.bf16 %v764_v60, %v761_v55  ;;  %v1073_v60 = vld [vmem:[#allocation17] sm:$0x1] }
 0x560   :  { %1423 = vmatprep.mubr.bf16.mxu1 %v824_v61 }
 0x561   :  { %1424 = vmatmul.mubr.bf16.vlgmr.msra.gmra.mrb[32].mxu1 %v825_v56  ;;  %v1115_v56 = vshrl.u32 %v1114_v57, 7 }
 0x562   :  { %v1397_v62 = vpop.f32.mrb[36].mxu0 }
 0x563   :  { %v777_v63 = vpop.f32.mrb[37].mxu0  ;;  %v1116_v61 = vsub.s32 0, %v1115_v56 }
 0x564   :  { %v1398_v2 = vpop.f32.mrb[38].mxu0 }
 0x565   :  { %v827_v3 = vpack.c.bf16 %v1398_v2, %v1397_v62  ;;  %v780_v5 = vpop.f32.mrb[39].mxu0 }
 0x566   :  { %v826_v6 = vpack.c.bf16 %v780_v5, %v777_v63 }
 0x568   :  { %1427 = vmatprep.mubr.bf16.mxu1 %v826_v6 }
 0x569   :  { %1428 = vmatmul.mubr.bf16.gmra.mrb[36].mxu1 %v827_v3 }
 0x56a   :  { %v1401_v10 = vpop.f32.mrb[40].mxu0 }
 0x56b   :  { %v793_v11 = vpop.f32.mrb[41].mxu0 }
 0x56c   :  { %v1402_v14 = vpop.f32.mrb[42].mxu0 }
 0x56d   :  { %v796_v16 = vpop.f32.mrb[43].mxu0  ;;  %v829_v18 = vpack.c.bf16 %v1402_v14, %v1401_v10 }
 0x56e   :  { %v828_v17 = vpack.c.bf16 %v796_v16, %v793_v11 }
 0x570   :  { %1431 = vmatprep.mubr.bf16.mxu1 %v828_v17 }
 0x571   :  { %1432 = vmatmul.mubr.bf16.gmra.mrb[40].mxu1 %v829_v18 }
 0x572   :  { %v1405_v22 = vpop.f32.mrb[44].mxu0 }
 0x573   :  { %v809_v23 = vpop.f32.mrb[45].mxu0 }
 0x574   :  { %v1406_v26 = vpop.f32.mrb[46].mxu0 }
 0x575   :  { %v812_v28 = vpop.f32.mrb[47].mxu0  ;;  %v831_v30 = vpack.c.bf16 %v1406_v26, %v1405_v22 }
 0x576   :  { %v830_v29 = vpack.c.bf16 %v812_v28, %v809_v23 }
 0x578   :  { %1435 = vmatprep.mubr.bf16.mxu1 %v830_v29 }
 0x579   :  { %1436 = vmatmul.mubr.bf16.gmra.mrb[44].mxu1 %v831_v30 }
 0x634   :  { %v1425_v35 = vpop.f32.mrb[32].mxu1 }
 0x635   :  { %v897_v36 = vpop.f32.mrb[33].mxu1 }
 0x636   :  { %v898_v37 = vadd.f32 %v1141_v34, %v897_v36  ;;  %v1426_v38 = vpop.f32.mrb[34].mxu1 }
 0x637   :  { %v900_v39 = vpop.f32.mrb[35].mxu1 }
 0x638   :  { %v960_v40 = vmax.f32 %v898_v37, 0.0 }
 0x63a   :  { %v1040_v41 = vrot.slane %v960_v40, 4 }
 0x63c   :  { %v1041_v42 = vadd.f32 %v1040_v41, %v960_v40  ;;  %v1429_v43 = vpop.f32.mrb[36].mxu1 }
 0x63d   :  { %v913_v44 = vpop.f32.mrb[37].mxu1 }
 0x63e   :  { %v1042_v45 = vrot.slane %v1041_v42, 2  ;;  %v1430_v46 = vpop.f32.mrb[38].mxu1 }
 0x63f   :  { %v916_v47 = vpop.f32.mrb[39].mxu1 }
 0x640   :  { %v1043_v48 = vadd.f32 %v1042_v45, %v1041_v42 }
 0x642   :  { %v1044_v49 = vrot.slane %v1043_v48, 1 }
 0x644   :  { %v1045_v50 = vadd.f32 %v1044_v49, %v1043_v48  ;;  %v1433_v53 = vpop.f32.mrb[40].mxu1 }
 0x645   :  { %v929_v58 = vpop.f32.mrb[41].mxu1 }
 0x646   :  { %v1047_v51 = vmul.f32 0.125, %v1045_v50  ;;  %v1434_v59 = vpop.f32.mrb[42].mxu1 }
 0x647   :  { %v932_v0 = vpop.f32.mrb[43].mxu1 }
 0x648   :  { %v1048_v52 = vpack.c.bf16 %v1047_v51, %v1047_v51 }
 0x64a   :  { %1456 = vmatmul.mubr.bf16.vlgmr.msra.gmra.mrb[48].mxu0 %v1048_v52 }
 0x64c   :  { %v1437_v1 = vpop.f32.mrb[44].mxu1 }
 0x64d   :  { %v945_v4 = vpop.f32.mrb[45].mxu1 }
 0x64e   :  { %v1438_v54 = vpop.f32.mrb[46].mxu1 }
 0x64f   :  { %v948_v55 = vpop.f32.mrb[47].mxu1 }
 0x71d   :  { %v1108_v62 = vpop.f32.mrb[48].mxu0 }
 0x71e   :  { %v1109_v63 = vadd.f32 %v1108_v62, %v1073_v60  ;;  %v1457_v2 = vpop.f32.mrb[49].mxu0 }
 0x71f   :  { %v1111_v3 = vpop.f32.mrb[50].mxu0 }
 0x720   :  { %v1117_v5 = vrot.slane %v1109_v63, %v1116_v61  ;;  %v1458_v6 = vpop.f32.mrb[51].mxu0 }
 0x722   :  { %1118 = vst [vmem:[#allocation19] sm:$0xff] %v1117_v5 }
 0x723   :  { %1705 = shalt.err (!%p1702_p0)
}
 0x724   :  { %s1706_s28 = scalar_lea.hbm %s2031_s10, 128 }
 0x725   :  { %p1707_p1 = scmp.ne.s32.totalorder %s2031_s10, %s1706_s28  ;;  %p1710_p2 = scmp.lt.u32.totalorder %s1706_s28, %s2031_s10 }
 0x727   :  { %p1712_p3 = pnand %p1710_p2, %p1707_p1 }
 0x729   :  { %1715 = shalt.err (!%p1712_p3)
}
 0x72a   :  { %1128 = dma.vmem_to_hbm [thread:$0]  %s1126_s26, 128, %s2031_s10, [#allocation4]  }
 0x72b   :  { %1728 = dma.done.wait [#allocation4], 128  }
 0x72c   :  { %1729 = vsyncadd [#allocation4], 4294967168 }
 0x72d   :  { %1132 = vsyncpa [#allocation3], 1 }
 0x72e   :  { %1133 = vsyncpa [#allocation6], 1 }
 0x72f   :  { %1134 = vsyncpa [#allocation9], 1 }
 0x730   :  { %1135 = vsyncpa [#allocation12], 1 }
 0x731   :  { %1136 = vsyncpa [#allocation15], 1 }
 0x732   :  { %1137 = vsyncpa [#allocation18], 1 }
 0x733   :  { %1138 = vsyncpa [#allocation4], 1 }

</bundles_post_ra>
